<compile_context>
chip_gen: v6e
topology: v6e:2x2x1
jax: 0.10.0
libtpu: 0.0.40
codegen_flags: <defaults>
</compile_context>

<pallas_src>
import math

import numpy as np
import jax
import jax.numpy as jnp
from jax import lax
from jax.experimental import pallas as pl
from jax.experimental.pallas import tpu as pltpu


def dcap_kernel(x_ref, x0_ref, wq_ref, wk_ref, wv_ref, neg_ref, bsel_ref,
                lexp_ref, rsel_ref, out_ref):
    """One batch tile (TB rows) per grid step.

    x_ref   : (TB, S, D)   raw features
    x0_ref  : (TB, S)      x[..., 0]   (feature column 0, pre-sliced in the wrapper)
    wq_ref  : (D, H)       head-0 query weights, 1/sqrt(H) folded in
    wk_ref  : (D, H)       head-0 key weights
    wv_ref  : (D, 1)       head-0 value weights, column 0 only
    neg_ref : (BLK, BLK)   additive block-diagonal mask (0 on-block, -1e30 off-block)
    bsel_ref: (SUB, BLK)   bsel[b, i] = 1  iff  i // S == b       (row -> batch fold)
    lexp_ref: (BLK, 128)   lexp[i, p] = 1  iff  i %  S == left[p] (left-field gather)
    rsel_ref: (S, 128)     rsel[s, p] = 1  iff  s == right[p]     (right-field gather)
    out_ref : (TB, 128)    out[b, p] = z0[b, left[p]] * x[b, right[p], 0]
    """
    TB, S, D = x_ref.shape
    sub_rows, BLK = bsel_ref.shape          # BLK == sub_rows * S  (128 for S=8)
    n_sub = TB // sub_rows

    # ---- head-0 projections on the MXU over the whole batch tile at once -----------
    xb = x_ref[...].reshape(TB * S, D)                                   # free reshape
    q = jnp.dot(xb, wq_ref[...], preferred_element_type=jnp.float32)    # (TB*S, H)
    k = jnp.dot(xb, wk_ref[...], preferred_element_type=jnp.float32)    # (TB*S, H)
    v = jnp.dot(xb, wv_ref[...], preferred_element_type=jnp.float32)    # (TB*S, 1)

    neg = neg_ref[...]
    bsel = bsel_ref[...]
    lexp = lexp_ref[...]

    # ---- attention: sub_rows batch rows at a time as one dense (BLK, BLK) problem ---
    zp_parts = []
    for t in range(n_sub):
        r0 = t * BLK
        qt = q[r0:r0 + BLK]                                              # (BLK, H)
        kt = k[r0:r0 + BLK]
        vt = v[r0:r0 + BLK]                                              # (BLK, 1)
        st = lax.dot_general(qt, kt, (((1,), (1,)), ((), ())),
                             preferred_element_type=jnp.float32) + neg   # (BLK, BLK)
        st = st - jnp.max(st, axis=-1, keepdims=True)
        et = jnp.exp(st)                                                 # off-block -> 0
        inv = pl.reciprocal(jnp.sum(et, axis=-1, keepdims=True), approx=True)
        zt = jnp.dot(et * inv, vt, preferred_element_type=jnp.float32)   # (BLK, 1)
        # Fold (row -> batch) and the left-field gather into matmuls, avoiding any
        # column -> matrix relayout:  zp[b, p] = sum_i bsel[b, i] * zt[i] * lexp[i, p]
        zp_parts.append(jnp.dot(bsel, zt * lexp,
                                preferred_element_type=jnp.float32))      # (SUB, 128)

    zp = jnp.concatenate(zp_parts, axis=0)                                # (TB, 128)
    xp = jnp.dot(x0_ref[...], rsel_ref[...],
                 preferred_element_type=jnp.float32)                      # (TB, 128)
    out_ref[...] = zp * xp


def dcap_forward(x, wq, wk, wv, *, fields, heads, hidden,
                 out_lanes=128, max_sub_tiles=16):
    """DCAPLayer forward (n_layers=1, inner product).  Returns (B, fields*(fields-1)//2)."""
    B, S, D = x.shape
    assert S == fields
    P = fields * (fields - 1) // 2
    assert P <= out_lanes and S <= 128

    # ---- head-0 / column-0 dead-code elimination + host-side scale folding ----------
    scale = 1.0 / math.sqrt(hidden)
    wq0 = (wq[:, :hidden] * scale).astype(jnp.float32)
    wk0 = wk[:, :hidden].astype(jnp.float32)
    wv0 = wv[:, 0:1].astype(jnp.float32)

    # ---- static field-pair enumeration + one-hot gather / mask constants ------------
    left, right = [], []
    for i in range(fields - 1):
        for j in range(i + 1, fields):
            left.append(i)
            right.append(j)

    sub_rows = max(1, 128 // S)          # batch rows per dense attention sub-tile
    BLK = sub_rows * S                   # == 128 when S divides 128

    bd = np.repeat(np.arange(sub_rows), S)                       # batch id per row
    srep = np.tile(np.arange(S), sub_rows)                       # field id per row
    neg_mask = np.where(bd[:, None] == bd[None, :], 0.0, -1e30).astype(np.float32)
    bsel = (np.arange(sub_rows)[:, None] == bd[None, :]).astype(np.float32)
    lexp = np.zeros((BLK, out_lanes), np.float32)
    rsel = np.zeros((S, out_lanes), np.float32)
    for p in range(P):
        lexp[srep == left[p], p] = 1.0
        rsel[right[p], p] = 1.0

    # ---- batch tiling: TB rows per grid step (multiple of sub_rows), zero-pad B -----
    n_sub = min(max_sub_tiles, -(-B // sub_rows))
    TB = sub_rows * n_sub
    B_pad = -(-B // TB) * TB
    if B_pad != B:
        x = jnp.pad(x, ((0, B_pad - B), (0, 0), (0, 0)))
    x0 = x[:, :, 0]                      # (B_pad, S) feature column 0 (layout plumbing)

    out = pl.pallas_call(
        dcap_kernel,
        out_shape=jax.ShapeDtypeStruct((B_pad, out_lanes), jnp.float32),
        grid_spec=pltpu.PrefetchScalarGridSpec(
            num_scalar_prefetch=0,
            grid=(B_pad // TB,),
            in_specs=[
                pl.BlockSpec((TB, S, D), lambda b: (b, 0, 0)),        # x tile
                pl.BlockSpec((TB, S), lambda b: (b, 0)),              # x[..., 0] tile
                pl.BlockSpec((D, hidden), lambda b: (0, 0)),          # Wq0 (resident)
                pl.BlockSpec((D, hidden), lambda b: (0, 0)),          # Wk0
                pl.BlockSpec((D, 1), lambda b: (0, 0)),               # Wv col 0
                pl.BlockSpec((BLK, BLK), lambda b: (0, 0)),           # block-diag mask
                pl.BlockSpec((sub_rows, BLK), lambda b: (0, 0)),      # row->batch fold
                pl.BlockSpec((BLK, out_lanes), lambda b: (0, 0)),     # left gather
                pl.BlockSpec((S, out_lanes), lambda b: (0, 0)),       # right gather
            ],
            out_specs=pl.BlockSpec((TB, out_lanes), lambda b: (b, 0)),
        ),
        compiler_params=pltpu.CompilerParams(dimension_semantics=("parallel",)),
    )(x, x0, wq0, wk0, wv0,
      jnp.asarray(neg_mask), jnp.asarray(bsel), jnp.asarray(lexp), jnp.asarray(rsel))

    return out[:B, :P]


def dcap_reference(x, wq, wk, wv, *, fields, heads, hidden):
    """Pure-JAX reference for the assumed module semantics (eval mode, n_layers=1)."""
    q = jnp.einsum('bsd,dk->bsk', x, wq)
    k = jnp.einsum('bsd,dk->bsk', x, wk)
    v = jnp.einsum('bsd,dk->bsk', x, wv)
    scale = 1.0 / math.sqrt(hidden)
    zs = []
    for h in range(heads):
        sl = slice(h * hidden, (h + 1) * hidden)
        s = jnp.einsum('bqh,bkh->bqk', q[..., sl], k[..., sl]) * scale
        a = jax.nn.softmax(s, axis=-1)
        zs.append(jnp.einsum('bqk,bkh->bqh', a, v[..., sl]))
    z = jnp.concatenate(zs, axis=-1)
    left, right = [], []
    for i in range(fields - 1):
        for j in range(i + 1, fields):
            left.append(i)
            right.append(j)
    zp = z[:, jnp.asarray(left), 0]
    xp = x[:, jnp.asarray(right), 0]
    return zp * xp


if __name__ == "__main__":
    B, fields, D = 2, 8, 32              # batch, seq_len/fields, n_dim (= in_shape)
    heads, hidden = 4, 16
    HK = heads * hidden

    key = jax.random.PRNGKey(0)
    kx, kq, kk, kv = jax.random.split(key, 4)
    std = math.sqrt(2.0 / (D + HK))      # xavier-normal (reset_parameters)
    wq = std * jax.random.normal(kq, (D, HK), jnp.float32)
    wk = std * jax.random.normal(kk, (D, HK), jnp.float32)
    wv = std * jax.random.normal(kv, (D, HK), jnp.float32)
    x = jax.random.normal(kx, (B, fields, D), jnp.float32)

    out = dcap_forward(x, wq, wk, wv, fields=fields, heads=heads, hidden=hidden)
    out = jax.block_until_ready(out)

    P = fields * (fields - 1) // 2
    assert out.shape == (B, P), (out.shape, (B, P))
    assert bool(jnp.all(jnp.isfinite(out)))

    ref = dcap_reference(x, wq, wk, wv, fields=fields, heads=heads, hidden=hidden)
    err = float(jnp.max(jnp.abs(out - ref)))
    tol = 1e-3 + 2e-2 * float(jnp.max(jnp.abs(ref)))
    assert err <= tol, f"max abs err {err} > tol {tol}"
    print("KERNEL_OK")
</pallas_src>

<mosaic_0001>
module attributes {stable_mosaic.version = 11 : i64} {
  func.func @dcap_kernel(%arg0: i32, %arg1: memref<16x8x32xf32, #tpu.memory_space<vmem>>, %arg2: memref<16x8xf32, #tpu.memory_space<vmem>>, %arg3: memref<32x16xf32, #tpu.memory_space<vmem>>, %arg4: memref<32x16xf32, #tpu.memory_space<vmem>>, %arg5: memref<32x1xf32, #tpu.memory_space<vmem>>, %arg6: memref<128x128xf32, #tpu.memory_space<vmem>>, %arg7: memref<16x128xf32, #tpu.memory_space<vmem>>, %arg8: memref<128x128xf32, #tpu.memory_space<vmem>>, %arg9: memref<8x128xf32, #tpu.memory_space<vmem>>, %arg10: memref<16x128xf32, #tpu.memory_space<vmem>>) attributes {dimension_semantics = [#tpu.dimension_semantics<parallel>], iteration_bounds = array<i64: 1>, scalar_prefetch = 0 : i64, scratch_operands = 0 : i64, tpu.core_type = #tpu.core_type<tc>, window_params = [{transform_indices = @transform_0, window_bounds = array<i64: 16, 8, 32>}, {transform_indices = @transform_1, window_bounds = array<i64: 16, 8>}, {pipeline_mode = #tpu.pipeline_mode<synchronous>, transform_indices = @transform_2, window_bounds = array<i64: 32, 16>}, {pipeline_mode = #tpu.pipeline_mode<synchronous>, transform_indices = @transform_3, window_bounds = array<i64: 32, 16>}, {pipeline_mode = #tpu.pipeline_mode<synchronous>, transform_indices = @transform_4, window_bounds = array<i64: 32, 1>}, {pipeline_mode = #tpu.pipeline_mode<synchronous>, transform_indices = @transform_5, window_bounds = array<i64: 128, 128>}, {pipeline_mode = #tpu.pipeline_mode<synchronous>, transform_indices = @transform_6, window_bounds = array<i64: 16, 128>}, {pipeline_mode = #tpu.pipeline_mode<synchronous>, transform_indices = @transform_7, window_bounds = array<i64: 128, 128>}, {pipeline_mode = #tpu.pipeline_mode<synchronous>, transform_indices = @transform_8, window_bounds = array<i64: 8, 128>}, {transform_indices = @transform_9, window_bounds = array<i64: 16, 128>}]} {
    %c0 = arith.constant 0 : index
    %c0_0 = arith.constant 0 : index
    %c0_1 = arith.constant 0 : index
    %0 = vector.load %arg1[%c0, %c0_0, %c0_1] : memref<16x8x32xf32, #tpu.memory_space<vmem>>, vector<16x8x32xf32>
    %1 = vector.shape_cast %0 : vector<16x8x32xf32> to vector<128x32xf32>
    %c0_2 = arith.constant 0 : index
    %c0_3 = arith.constant 0 : index
    %2 = vector.load %arg3[%c0_2, %c0_3] : memref<32x16xf32, #tpu.memory_space<vmem>>, vector<32x16xf32>
    %cst = arith.constant dense<0.000000e+00> : vector<128x16xf32>
    %3 = tpu.matmul %1, %2, %cst {dimension_numbers = #tpu.dot_dimension_numbers<[1], [0], [0], [1], [0, 0, 1, 1], [], []>} : vector<128x32xf32>, vector<32x16xf32>, vector<128x16xf32> -> vector<128x16xf32>
    %c0_4 = arith.constant 0 : index
    %c0_5 = arith.constant 0 : index
    %4 = vector.load %arg4[%c0_4, %c0_5] : memref<32x16xf32, #tpu.memory_space<vmem>>, vector<32x16xf32>
    %cst_6 = arith.constant dense<0.000000e+00> : vector<128x16xf32>
    %5 = tpu.matmul %1, %4, %cst_6 {dimension_numbers = #tpu.dot_dimension_numbers<[1], [0], [0], [1], [0, 0, 1, 1], [], []>} : vector<128x32xf32>, vector<32x16xf32>, vector<128x16xf32> -> vector<128x16xf32>
    %c0_7 = arith.constant 0 : index
    %c0_8 = arith.constant 0 : index
    %6 = vector.load %arg5[%c0_7, %c0_8] : memref<32x1xf32, #tpu.memory_space<vmem>>, vector<32x1xf32>
    %cst_9 = arith.constant dense<0.000000e+00> : vector<128x1xf32>
    %7 = tpu.matmul %1, %6, %cst_9 {dimension_numbers = #tpu.dot_dimension_numbers<[1], [0], [0], [1], [0, 0, 1, 1], [], []>} : vector<128x32xf32>, vector<32x1xf32>, vector<128x1xf32> -> vector<128x1xf32>
    %c0_10 = arith.constant 0 : index
    %c0_11 = arith.constant 0 : index
    %8 = vector.load %arg6[%c0_10, %c0_11] : memref<128x128xf32, #tpu.memory_space<vmem>>, vector<128x128xf32>
    %c0_12 = arith.constant 0 : index
    %c0_13 = arith.constant 0 : index
    %9 = vector.load %arg7[%c0_12, %c0_13] : memref<16x128xf32, #tpu.memory_space<vmem>>, vector<16x128xf32>
    %c0_14 = arith.constant 0 : index
    %c0_15 = arith.constant 0 : index
    %10 = vector.load %arg8[%c0_14, %c0_15] : memref<128x128xf32, #tpu.memory_space<vmem>>, vector<128x128xf32>
    %cst_16 = arith.constant dense<0.000000e+00> : vector<128x128xf32>
    %11 = tpu.matmul %3, %5, %cst_16 {dimension_numbers = #tpu.dot_dimension_numbers<[1], [1], [0], [0], [0, 0, 1, 0], [], []>} : vector<128x16xf32>, vector<128x16xf32>, vector<128x128xf32> -> vector<128x128xf32>
    %12 = arith.addf %11, %8 : vector<128x128xf32>
    %cst_17 = arith.constant dense<0xFF800000> : vector<128xf32>
    %13 = vector.multi_reduction <maximumf>, %12, %cst_17 [1] : vector<128x128xf32> to vector<128xf32>
    %14 = vector.shape_cast %13 : vector<128xf32> to vector<128x1xf32>
    %15 = vector.broadcast %14 : vector<128x1xf32> to vector<128x128xf32>
    %16 = arith.subf %12, %15 : vector<128x128xf32>
    %17 = math.exp %16 : vector<128x128xf32>
    %cst_18 = arith.constant dense<0.000000e+00> : vector<128xf32>
    %18 = vector.multi_reduction <add>, %17, %cst_18 [1] : vector<128x128xf32> to vector<128xf32>
    %19 = vector.shape_cast %18 : vector<128xf32> to vector<128x1xf32>
    %20 = tpu.reciprocal %19 {approx = true} : vector<128x1xf32> -> vector<128x1xf32>
    %21 = vector.broadcast %20 : vector<128x1xf32> to vector<128x128xf32>
    %22 = arith.mulf %17, %21 : vector<128x128xf32>
    %cst_19 = arith.constant dense<0.000000e+00> : vector<128x1xf32>
    %23 = tpu.matmul %22, %7, %cst_19 {dimension_numbers = #tpu.dot_dimension_numbers<[1], [0], [0], [1], [0, 0, 1, 1], [], []>} : vector<128x128xf32>, vector<128x1xf32>, vector<128x1xf32> -> vector<128x1xf32>
    %24 = vector.broadcast %23 : vector<128x1xf32> to vector<128x128xf32>
    %25 = arith.mulf %24, %10 : vector<128x128xf32>
    %cst_20 = arith.constant dense<0.000000e+00> : vector<16x128xf32>
    %26 = tpu.matmul %9, %25, %cst_20 {dimension_numbers = #tpu.dot_dimension_numbers<[1], [0], [0], [1], [0, 0, 1, 1], [], []>} : vector<16x128xf32>, vector<128x128xf32>, vector<16x128xf32> -> vector<16x128xf32>
    %c0_21 = arith.constant 0 : index
    %c0_22 = arith.constant 0 : index
    %27 = vector.load %arg2[%c0_21, %c0_22] : memref<16x8xf32, #tpu.memory_space<vmem>>, vector<16x8xf32>
    %c0_23 = arith.constant 0 : index
    %c0_24 = arith.constant 0 : index
    %28 = vector.load %arg9[%c0_23, %c0_24] : memref<8x128xf32, #tpu.memory_space<vmem>>, vector<8x128xf32>
    %cst_25 = arith.constant dense<0.000000e+00> : vector<16x128xf32>
    %29 = tpu.matmul %27, %28, %cst_25 {dimension_numbers = #tpu.dot_dimension_numbers<[1], [0], [0], [1], [0, 0, 1, 1], [], []>} : vector<16x8xf32>, vector<8x128xf32>, vector<16x128xf32> -> vector<16x128xf32>
    %30 = arith.mulf %26, %29 : vector<16x128xf32>
    %c0_26 = arith.constant 0 : index
    %c0_27 = arith.constant 0 : index
    %31 = vector.load %arg10[%c0_26, %c0_27] : memref<16x128xf32, #tpu.memory_space<vmem>>, vector<16x128xf32>
    tpu.vector_store %arg10[%c0_26, %c0_27], %30 {strides = array<i32>} : memref<16x128xf32, #tpu.memory_space<vmem>>, vector<16x128xf32>,
    return
  }
  func.func @transform_0(%arg0: i32) -> (i32, i32, i32) {
    %c0_i32 = arith.constant 0 : i32
    %c0_i32_0 = arith.constant 0 : i32
    %c0_i32_1 = arith.constant 0 : i32
    return %arg0, %c0_i32, %c0_i32_0 : i32, i32, i32
  }
  func.func @transform_1(%arg0: i32) -> (i32, i32) {
    %c0_i32 = arith.constant 0 : i32
    %c0_i32_0 = arith.constant 0 : i32
    return %arg0, %c0_i32 : i32, i32
  }
  func.func @transform_2(%arg0: i32) -> (i32, i32) {
    %c0_i32 = arith.constant 0 : i32
    %c0_i32_0 = arith.constant 0 : i32
    %c0_i32_1 = arith.constant 0 : i32
    return %c0_i32, %c0_i32_0 : i32, i32
  }
  func.func @transform_3(%arg0: i32) -> (i32, i32) {
    %c0_i32 = arith.constant 0 : i32
    %c0_i32_0 = arith.constant 0 : i32
    %c0_i32_1 = arith.constant 0 : i32
    return %c0_i32, %c0_i32_0 : i32, i32
  }
  func.func @transform_4(%arg0: i32) -> (i32, i32) {
    %c0_i32 = arith.constant 0 : i32
    %c0_i32_0 = arith.constant 0 : i32
    %c0_i32_1 = arith.constant 0 : i32
    return %c0_i32, %c0_i32_0 : i32, i32
  }
  func.func @transform_5(%arg0: i32) -> (i32, i32) {
    %c0_i32 = arith.constant 0 : i32
    %c0_i32_0 = arith.constant 0 : i32
    %c0_i32_1 = arith.constant 0 : i32
    return %c0_i32, %c0_i32_0 : i32, i32
  }
  func.func @transform_6(%arg0: i32) -> (i32, i32) {
    %c0_i32 = arith.constant 0 : i32
    %c0_i32_0 = arith.constant 0 : i32
    %c0_i32_1 = arith.constant 0 : i32
    return %c0_i32, %c0_i32_0 : i32, i32
  }
  func.func @transform_7(%arg0: i32) -> (i32, i32) {
    %c0_i32 = arith.constant 0 : i32
    %c0_i32_0 = arith.constant 0 : i32
    %c0_i32_1 = arith.constant 0 : i32
    return %c0_i32, %c0_i32_0 : i32, i32
  }
  func.func @transform_8(%arg0: i32) -> (i32, i32) {
    %c0_i32 = arith.constant 0 : i32
    %c0_i32_0 = arith.constant 0 : i32
    %c0_i32_1 = arith.constant 0 : i32
    return %c0_i32, %c0_i32_0 : i32, i32
  }
  func.func @transform_9(%arg0: i32) -> (i32, i32) {
    %c0_i32 = arith.constant 0 : i32
    %c0_i32_0 = arith.constant 0 : i32
    return %arg0, %c0_i32 : i32, i32
  }
}

</mosaic_0001>

<bundles_post_ra>
// kernel: tpu_custom_call.1
= control target key start
LH: loop header
LB: loop body
LE: loop exit
PB: predicated region body
PF: predicated region fallthrough
CT: control target
= control target key end

     0   :  { %14 = vsyncpa [#allocation3], 0  ;;  %s2539_s0 = inlined_call_operand.vmem [shape: f32[16,8,32], index: 0, kind: input, shape index: {}]   ;;  %s2540_s1 = inlined_call_operand.vmem [shape: f32[16,8], index: 1, kind: input, shape index: {}]   ;;  %s2541_s2 = inlined_call_operand.vmem [shape: f32[32,16], index: 2, kind: input, shape index: {}]   ;;  %s2542_s3 = inlined_call_operand.vmem [shape: f32[32,16], index: 3, kind: input, shape index: {}]   ;;  %s2543_s4 = inlined_call_operand.vmem [shape: f32[32,1], index: 4, kind: input, shape index: {}]   ;;  %s2544_s5 = inlined_call_operand.hbm [shape: f32[128,128], index: 5, kind: input, shape index: {}]   ;;  %s2545_s6 = inlined_call_operand.vmem [shape: f32[16,128], index: 6, kind: input, shape index: {}]   ;;  %s2546_s7 = inlined_call_operand.hbm [shape: f32[128,128], index: 7, kind: input, shape index: {}]   ;;  %s2547_s8 = inlined_call_operand.hbm [shape: f32[8,128], index: 8, kind: input, shape index: {}]   ;;  %s2548_s9 = inlined_call_operand.hbm [shape: f32[16,128], index: 9, kind: output, shape index: {}]  }
   0x1   :  { %15 = vsyncpa [#allocation6], 0 }
   0x2   :  { %16 = vsyncpa [#allocation4], 0  ;;  %s2061_s30 = smov [#allocation5]   ;;  %s2062_s11 = smov [#allocation2]  }
   0x3   :  { %s46_s10 = sshll.u32 %s2061_s30, 4  ;;  %s32_s12 = sshll.u32 %s2062_s11, 4  ;;  %s47_s10 = int_to_ptr.vmem [resolvable:$true] %s46_s10  ;;  %s33_s12 = int_to_ptr.vmem [resolvable:$true] %s32_s12 }
   0x4   :  { %s1983_s13 = scalar_lea.vmem %s47_s10, 2048  ;;  %p1988_p1 = scmp.lt.s32.totalorder %s47_s10, %s47_s10 }
   0x5   :  { %p1984_p0 = scmp.ne.s32.totalorder %s47_s10, %s1983_s13  ;;  %p1989_p2 = scmp.lt.s32.totalorder %s1983_s13, %s1983_s13 }
   0x7   :  { %p1990_p3 = por %p1989_p2, %p1988_p1 }
   0x9   :  { %p1991_p4 = pnand %p1990_p3, %p1984_p0 }
   0xb   :  { %1994 = shalt.err (!%p1991_p4)
}
   0xc   :  { %s2063_s14 = smov 128   ;;  %s2064_s15 = smov 8  }
   0xd   :  { %52 = dma.hbm_to_vmem [thread:$0]  %s2546_s7, 2048, %s47_s10, [#allocation6], %s2063_s14, %s2063_s14, %s2064_s15  }
   0xe   :  { %s2003_s18 = scalar_lea.vmem %s33_s12, 2048  ;;  %p2008_p6 = scmp.lt.s32.totalorder %s33_s12, %s33_s12 }
   0xf   :  { %p2004_p5 = scmp.ne.s32.totalorder %s33_s12, %s2003_s18  ;;  %p2009_p7 = scmp.lt.s32.totalorder %s2003_s18, %s2003_s18 }
  0x11   :  { %p2010_p8 = por %p2009_p7, %p2008_p6 }
  0x13   :  { %p2011_p9 = pnand %p2010_p8, %p2004_p5 }
  0x15   :  { %2014 = shalt.err (!%p2011_p9)
}
  0x16   :  { %38 = dma.hbm_to_vmem [thread:$0]  %s2544_s5, 2048, %s33_s12, [#allocation3], %s2063_s14, %s2063_s14, %s2064_s15  }
  0x17   :  { %s2065_s21 = smov [#allocation7]  }
  0x18   :  { %s59_s22 = sshll.u32 %s2065_s21, 4  ;;  %s60_s22 = int_to_ptr.vmem [resolvable:$true] %s59_s22 }
  0x19   :  { %s2023_s23 = scalar_lea.vmem %s60_s22, 128  ;;  %p2028_p11 = scmp.lt.s32.totalorder %s60_s22, %s60_s22 }
  0x1a   :  { %p2024_p10 = scmp.ne.s32.totalorder %s60_s22, %s2023_s23  ;;  %p2029_p12 = scmp.lt.s32.totalorder %s2023_s23, %s2023_s23 }
  0x1c   :  { %p2030_p13 = por %p2029_p12, %p2028_p11 }
  0x1e   :  { %p2031_p0 = pnand %p2030_p13, %p2024_p10 }
  0x20   :  { %2034 = shalt.err (!%p2031_p0)
}
  0x21   :  { %62 = dma.hbm_to_vmem [thread:$0]  %s2547_s8, 128, %s60_s22, [#allocation6]  }
  0x22   :  { %2055 = dma.done.wait [#allocation3], 2048  }
  0x23   :  { %2056 = vsyncadd [#allocation3], 4294965248 }
  0x24   :  { %2057 = dma.done.wait [#allocation6], 2176  }
  0x25   :  { %2058 = vsyncadd [#allocation6], 4294965120  ;;  %vm92_vm0 = vcmask 261120   ;;  %v289_v0 = vld [vmem:[%s2542_s3 + $0x18] sm:$0xff]  ;;  %v288_v1 = vld [vmem:[%s2542_s3 + $0x10] sm:$0xff]  ;;  %vm618_vm1 = vcmask 130048  }
  0x26   :  { %1686 = vmatprep.subr.mxu1 %v289_v0  ;;  %v2142_v2 = vld [vmem:[%s2539_s0] sm:$0xff]  ;;  %v287_v3 = vld [vmem:[%s2542_s3 + $0x8] sm:$0xff]  ;;  %v91_v6 = vld [vmem:[%s2541_s2 + $0x18] sm:$0xff]  ;;  %vm1323_vm2 = vcmask 64512   ;;  %s2067_s17 = smov [#allocation8]  }
  0x27   :  { %1687 = vmatpush3.msra.mxu1 %v289_v0  ;;  %1694 = vmatprep.mubr.msk.f32.mxu1 %vm92_vm0, %v2142_v2  ;;  %v286_v4 = vld [vmem:[%s2542_s3] sm:$0xff]  ;;  %v2157_v5 = vld [vmem:[%s2539_s0 + $0x8] sm:$0xff]  ;;  %v2165_v7 = vld [vmem:[%s2539_s0 + $0x10] sm:$0xff]  ;;  %s1414_s18 = sshll.u32 %s2067_s17, 4  ;;  %s1415_s18 = int_to_ptr.vmem [resolvable:$true] %s1414_s18 }
  0x28   :  { %1688 = vmatprep.subr.mxu1 %v288_v1  ;;  %1662 = vmatprep.mubr.msk.f32.mxu0 %vm92_vm0, %v2142_v2  ;;  %v90_v8 = vld [vmem:[%s2541_s2 + $0x10] sm:$0xff]  ;;  %v89_v9 = vld [vmem:[%s2541_s2 + $0x8] sm:$0xff]  ;;  %v2180_v10 = vld [vmem:[%s2539_s0 + $0x18] sm:$0xff]  ;;  %s2035_s19 = scalar_lea.vmem %s1415_s18, 256  ;;  %p2040_p2 = scmp.lt.s32.totalorder %s1415_s18, %s1415_s18 }
  0x29   :  { %1689 = vmatpush3.msra.mxu1 %v288_v1  ;;  %1654 = vmatprep.subr.mxu0 %v91_v6  ;;  %v88_v11 = vld [vmem:[%s2541_s2] sm:$0xff]  ;;  %v2197_v13 = vld [vmem:[%s2539_s0 + $0x28] sm:$0xff]  ;;  %v2202_v14 = vld [vmem:[%s2539_s0 + $0x30] sm:$0xff]  ;;  %p2036_p1 = scmp.ne.s32.totalorder %s1415_s18, %s2035_s19  ;;  %p2041_p3 = scmp.lt.s32.totalorder %s2035_s19, %s2035_s19 }
  0x2a   :  { %1690 = vmatprep.subr.mxu1 %v287_v3  ;;  %1655 = vmatpush3.msra.mxu0 %v91_v6  ;;  %v2188_v12 = vld [vmem:[%s2539_s0 + $0x20] sm:$0xff]  ;;  %v2215_v15 = vld [vmem:[%s2539_s0 + $0x38] sm:$0xff]  ;;  %v2233_v17 = vld [vmem:[%s2539_s0 + $0x48] sm:$0xff] }
  0x2b   :  { %1691 = vmatpush3.msra.mxu1 %v287_v3  ;;  %1656 = vmatprep.subr.mxu0 %v90_v8  ;;  %v2220_v16 = vld [vmem:[%s2539_s0 + $0x40] sm:$0xff]  ;;  %v2238_v18 = vld [vmem:[%s2539_s0 + $0x50] sm:$0xff]  ;;  %v2251_v19 = vld [vmem:[%s2539_s0 + $0x58] sm:$0xff]  ;;  %p2042_p4 = por %p2041_p3, %p2040_p2 }
  0x2c   :  { %1692 = vmatprep.subr.mxu1 %v286_v4  ;;  %1657 = vmatpush3.msra.mxu0 %v90_v8  ;;  %v2256_v20 = vld [vmem:[%s2539_s0 + $0x60] sm:$0xff]  ;;  %v2269_v21 = vld [vmem:[%s2539_s0 + $0x68] sm:$0xff]  ;;  %v2274_v22 = vld [vmem:[%s2539_s0 + $0x70] sm:$0xff] }
  0x2d   :  { %1693 = vmatpush3.msra.mxu1 %v286_v4  ;;  %1658 = vmatprep.subr.mxu0 %v89_v9  ;;  %v2287_v23 = vld [vmem:[%s2539_s0 + $0x78] sm:$0xff]  ;;  %v437_v57 = vld [vmem:[%s2543_s4 + $0x10] sm:$0xff]  ;;  %v436_v58 = vld [vmem:[%s2543_s4 + $0x8] sm:$0xff]  ;;  %p2043_p5 = pnand %p2042_p4, %p2036_p1 }
  0x2e   :  { %1695 = vmatmul.mubr.msk.f32.vlgmr.msra.gmra.mxu1 %vm92_vm0, %v2157_v5  ;;  %1659 = vmatpush3.msra.mxu0 %v89_v9  ;;  %v438_v24 = vld [vmem:[%s2543_s4 + $0x18] sm:$0xff]  ;;  %v435_v59 = vld [vmem:[%s2543_s4] sm:$0xff]  ;;  %v585_v0 = vld [vmem:[#allocation2 + $0x8] sm:$0xff] }
  0x2f   :  { %1697 = vmatprep.mubr.msk.f32.mxu1 %vm92_vm0, %v2165_v7  ;;  %1660 = vmatprep.subr.mxu0 %v88_v11  ;;  %v584_v61 = vld [vmem:[#allocation2] sm:$0xff]  ;;  %v587_v6 = vld [vmem:[#allocation2 + $0x18] sm:$0xff] }
  0x30   :  { %1661 = vmatpush3.msra.mxu0 %v88_v11  ;;  %v588_v8 = vld [vmem:[#allocation2 + $0x20] sm:$0xff] }
  0x31   :  { %1663 = vmatmul.mubr.msk.f32.vlgmr.msra.gmra.mxu0 %vm92_vm0, %v2157_v5  ;;  %1718 = vmatprep.subr.mxu0 %v438_v24 }
  0x32   :  { %1698 = vmatmul.mubr.msk.f32.gmra.mxu1 %vm92_vm0, %v2180_v10  ;;  %1665 = vmatprep.mubr.msk.f32.mxu0 %vm92_vm0, %v2165_v7 }
  0x33   :  { %1700 = vmatprep.mubr.msk.f32.mxu1 %vm92_vm0, %v2188_v12  ;;  %1719 = vmatpush3.msra.mxu0 %v438_v24  ;;  %v593_v24 = vld [vmem:[#allocation2 + $0x48] sm:$0xff] }
  0x34   :  { %1720 = vmatprep.subr.mxu0 %v437_v57 }
  0x35   :  { %1666 = vmatmul.mubr.msk.f32.gmra.mxu0 %vm92_vm0, %v2180_v10 }
  0x36   :  { %1701 = vmatmul.mubr.msk.f32.gmra.mxu1 %vm92_vm0, %v2197_v13  ;;  %1668 = vmatprep.mubr.msk.f32.mxu0 %vm92_vm0, %v2188_v12 }
  0x37   :  { %1703 = vmatprep.mubr.msk.f32.mxu1 %vm92_vm0, %v2202_v14  ;;  %1721 = vmatpush3.msra.mxu0 %v437_v57 }
  0x38   :  { %1722 = vmatprep.subr.mxu0 %v436_v58 }
  0x39   :  { %1669 = vmatmul.mubr.msk.f32.gmra.mxu0 %vm92_vm0, %v2197_v13 }
  0x3a   :  { %1704 = vmatmul.mubr.msk.f32.gmra.mxu1 %vm92_vm0, %v2215_v15  ;;  %1671 = vmatprep.mubr.msk.f32.mxu0 %vm92_vm0, %v2202_v14 }
  0x3b   :  { %1706 = vmatprep.mubr.msk.f32.mxu1 %vm92_vm0, %v2220_v16  ;;  %1723 = vmatpush3.msra.mxu0 %v436_v58 }
  0x3c   :  { %1724 = vmatprep.subr.mxu0 %v435_v59 }
  0x3d   :  { %1672 = vmatmul.mubr.msk.f32.gmra.mxu0 %vm92_vm0, %v2215_v15 }
  0x3e   :  { %1707 = vmatmul.mubr.msk.f32.gmra.mxu1 %vm92_vm0, %v2233_v17  ;;  %1674 = vmatprep.mubr.msk.f32.mxu0 %vm92_vm0, %v2220_v16 }
  0x3f   :  { %1709 = vmatprep.mubr.msk.f32.mxu1 %vm92_vm0, %v2238_v18  ;;  %1725 = vmatpush3.msra.mxu0 %v435_v59 }
  0x41   :  { %1675 = vmatmul.mubr.msk.f32.gmra.mxu0 %vm92_vm0, %v2233_v17 }
  0x42   :  { %1710 = vmatmul.mubr.msk.f32.gmra.mxu1 %vm92_vm0, %v2251_v19  ;;  %1677 = vmatprep.mubr.msk.f32.mxu0 %vm92_vm0, %v2238_v18 }
  0x43   :  { %1712 = vmatprep.mubr.msk.f32.mxu1 %vm92_vm0, %v2256_v20 }
  0x45   :  { %1678 = vmatmul.mubr.msk.f32.gmra.mxu0 %vm92_vm0, %v2251_v19 }
  0x46   :  { %1713 = vmatmul.mubr.msk.f32.gmra.mxu1 %vm92_vm0, %v2269_v21  ;;  %1680 = vmatprep.mubr.msk.f32.mxu0 %vm92_vm0, %v2256_v20 }
  0x47   :  { %1715 = vmatprep.mubr.msk.f32.mxu1 %vm92_vm0, %v2274_v22 }
  0x49   :  { %1681 = vmatmul.mubr.msk.f32.gmra.mxu0 %vm92_vm0, %v2269_v21 }
  0x4a   :  { %1716 = vmatmul.mubr.msk.f32.gmra.mxu1 %vm92_vm0, %v2287_v23  ;;  %1683 = vmatprep.mubr.msk.f32.mxu0 %vm92_vm0, %v2274_v22 }
  0x4d   :  { %1684 = vmatmul.mubr.msk.f32.gmra.mxu0 %vm92_vm0, %v2287_v23 }
  0x4e   :  { %1726 = vmatprep.mubr.msk.f32.mxu0 %vm92_vm0, %v2142_v2  ;;  %v586_v2 = vld [vmem:[#allocation2 + $0x10] sm:$0xff] }
  0x51   :  { %1727 = vmatmul.mubr.msk.f32.vlgmr.msra.gmra.mxu0 %vm92_vm0, %v2157_v5 }
  0x52   :  { %1729 = vmatprep.mubr.msk.f32.mxu0 %vm92_vm0, %v2165_v7 }
  0x55   :  { %1730 = vmatmul.mubr.msk.f32.gmra.mxu0 %vm92_vm0, %v2180_v10 }
  0x56   :  { %1732 = vmatprep.mubr.msk.f32.mxu0 %vm92_vm0, %v2188_v12  ;;  %v589_v12 = vld [vmem:[#allocation2 + $0x28] sm:$0xff] }
  0x59   :  { %1733 = vmatmul.mubr.msk.f32.gmra.mxu0 %vm92_vm0, %v2197_v13 }
  0x5a   :  { %1735 = vmatprep.mubr.msk.f32.mxu0 %vm92_vm0, %v2202_v14  ;;  %v590_v14 = vld [vmem:[#allocation2 + $0x30] sm:$0xff] }
  0x5d   :  { %1736 = vmatmul.mubr.msk.f32.gmra.mxu0 %vm92_vm0, %v2215_v15 }
  0x5e   :  { %1738 = vmatprep.mubr.msk.f32.mxu0 %vm92_vm0, %v2220_v16 }
  0x61   :  { %1739 = vmatmul.mubr.msk.f32.gmra.mxu0 %vm92_vm0, %v2233_v17 }
  0x62   :  { %1741 = vmatprep.mubr.msk.f32.mxu0 %vm92_vm0, %v2238_v18  ;;  %v591_v18 = vld [vmem:[#allocation2 + $0x38] sm:$0xff] }
  0x65   :  { %1742 = vmatmul.mubr.msk.f32.gmra.mxu0 %vm92_vm0, %v2251_v19 }
  0x66   :  { %1744 = vmatprep.mubr.msk.f32.mxu0 %vm92_vm0, %v2256_v20  ;;  %v592_v20 = vld [vmem:[#allocation2 + $0x40] sm:$0xff] }
  0x69   :  { %1745 = vmatmul.mubr.msk.f32.gmra.mxu0 %vm92_vm0, %v2269_v21 }
  0x6a   :  { %1747 = vmatprep.mubr.msk.f32.mxu0 %vm92_vm0, %v2274_v22 }
  0x6d   :  { %1748 = vmatmul.mubr.msk.f32.gmra.mxu0 %vm92_vm0, %v2287_v23 }
  0xee   :  { %v1696_v25 = vpop.f32.mrf.mxu1 }
  0xf0   :  { %v356_v26 = vpop.f32.mrf.mxu1 }
  0xf1   :  { %v1664_v29 = vpop.f32.mrf.mxu0 }
  0xf2   :  { %v1699_v27 = vpop.f32.mrf.mxu1 }
  0xf3   :  { %v207_v31 = vpop.f32.mrf.mxu0 }
  0xf4   :  { %v366_v28 = vpop.f32.mrf.mxu1  ;;  %1782 = vmatprep.mubr.msk.f32.mxu1 %vm618_vm1, %v207_v31 }
  0xf5   :  { %v1667_v43 = vpop.f32.mrf.mxu0 }
  0xf6   :  { %v1702_v30 = vpop.f32.mrf.mxu1 }
  0xf7   :  { %v217_v44 = vpop.f32.mrf.mxu0 }
  0xf8   :  { %v376_v32 = vpop.f32.mrf.mxu1 }
  0xf9   :  { %v1670_v45 = vpop.f32.mrf.mxu0 }
  0xfa   :  { %v1705_v33 = vpop.f32.mrf.mxu1 }
  0xfb   :  { %v227_v46 = vpop.f32.mrf.mxu0 }
  0xfc   :  { %v386_v34 = vpop.f32.mrf.mxu1 }
  0xfd   :  { %v1673_v47 = vpop.f32.mrf.mxu0 }
  0xfe   :  { %v1708_v35 = vpop.f32.mrf.mxu1 }
  0xff   :  { %v237_v48 = vpop.f32.mrf.mxu0 }
 0x100   :  { %v396_v36 = vpop.f32.mrf.mxu1 }
 0x101   :  { %v1676_v49 = vpop.f32.mrf.mxu0 }
 0x102   :  { %v1711_v37 = vpop.f32.mrf.mxu1 }
 0x103   :  { %v247_v50 = vpop.f32.mrf.mxu0 }
 0x104   :  { %v406_v38 = vpop.f32.mrf.mxu1 }
 0x105   :  { %v1679_v51 = vpop.f32.mrf.mxu0 }
 0x106   :  { %v1714_v39 = vpop.f32.mrf.mxu1 }
 0x107   :  { %v257_v52 = vpop.f32.mrf.mxu0 }
 0x108   :  { %v416_v40 = vpop.f32.mrf.mxu1 }
 0x109   :  { %v1682_v53 = vpop.f32.mrf.mxu0 }
 0x10a   :  { %v1717_v41 = vpop.f32.mrf.mxu1 }
 0x10b   :  { %1750 = vmatprep.subr.msk.mxu1 %vm618_vm1, %v1717_v41  ;;  %v267_v54 = vpop.f32.mrf.mxu0 }
 0x10c   :  { %v426_v42 = vpop.f32.mrf.mxu1  ;;  %1751 = vmatpush3.xpose.msk.msra.mxu1 %vm618_vm1, %v1717_v41 }
 0x10d   :  { %1752 = vmatprep.subr.msk.mxu1 %vm618_vm1, %v426_v42  ;;  %v1685_v55 = vpop.f32.mrf.mxu0 }
 0x10f   :  { %v277_v56 = vpop.f32.mrf.mxu0 }
 0x110   :  { %1753 = vmatpush3.xpose.msk.msra.mxu1 %vm618_vm1, %v426_v42 }
 0x111   :  { %1754 = vmatprep.subr.msk.mxu1 %vm618_vm1, %v1714_v39 }
 0x114   :  { %1755 = vmatpush3.xpose.msk.msra.mxu1 %vm618_vm1, %v1714_v39  ;;  %v599_v39 = vld [vmem:[#allocation2 + $0x78] sm:$0xff] }
 0x115   :  { %1756 = vmatprep.subr.msk.mxu1 %vm618_vm1, %v416_v40 }
 0x118   :  { %1757 = vmatpush3.xpose.msk.msra.mxu1 %vm618_vm1, %v416_v40 }
 0x119   :  { %1758 = vmatprep.subr.msk.mxu1 %vm618_vm1, %v1711_v37 }
 0x11c   :  { %1759 = vmatpush3.xpose.msk.msra.mxu1 %vm618_vm1, %v1711_v37 }
 0x11d   :  { %1760 = vmatprep.subr.msk.mxu1 %vm618_vm1, %v406_v38 }
 0x120   :  { %1761 = vmatpush3.xpose.msk.msra.mxu1 %vm618_vm1, %v406_v38  ;;  %v598_v38 = vld [vmem:[#allocation2 + $0x70] sm:$0xff] }
 0x121   :  { %1762 = vmatprep.subr.msk.mxu1 %vm618_vm1, %v1708_v35 }
 0x124   :  { %1763 = vmatpush3.xpose.msk.msra.mxu1 %vm618_vm1, %v1708_v35 }
 0x125   :  { %1764 = vmatprep.subr.msk.mxu1 %vm618_vm1, %v396_v36 }
 0x128   :  { %1765 = vmatpush3.xpose.msk.msra.mxu1 %vm618_vm1, %v396_v36  ;;  %v597_v36 = vld [vmem:[#allocation2 + $0x68] sm:$0xff] }
 0x129   :  { %1766 = vmatprep.subr.msk.mxu1 %vm618_vm1, %v1705_v33 }
 0x12c   :  { %1767 = vmatpush3.xpose.msk.msra.mxu1 %vm618_vm1, %v1705_v33 }
 0x12d   :  { %1768 = vmatprep.subr.msk.mxu1 %vm618_vm1, %v386_v34 }
 0x130   :  { %1769 = vmatpush3.xpose.msk.msra.mxu1 %vm618_vm1, %v386_v34 }
 0x131   :  { %1770 = vmatprep.subr.msk.mxu1 %vm618_vm1, %v1702_v30 }
 0x134   :  { %1771 = vmatpush3.xpose.msk.msra.mxu1 %vm618_vm1, %v1702_v30  ;;  %v595_v30 = vld [vmem:[#allocation2 + $0x58] sm:$0xff] }
 0x135   :  { %1772 = vmatprep.subr.msk.mxu1 %vm618_vm1, %v376_v32 }
 0x138   :  { %1773 = vmatpush3.xpose.msk.msra.mxu1 %vm618_vm1, %v376_v32  ;;  %v596_v32 = vld [vmem:[#allocation2 + $0x60] sm:$0xff] }
 0x139   :  { %1774 = vmatprep.subr.msk.mxu1 %vm618_vm1, %v1699_v27 }
 0x13c   :  { %1775 = vmatpush3.xpose.msk.msra.mxu1 %vm618_vm1, %v1699_v27 }
 0x13d   :  { %1776 = vmatprep.subr.msk.mxu1 %vm618_vm1, %v366_v28 }
 0x140   :  { %1777 = vmatpush3.xpose.msk.msra.mxu1 %vm618_vm1, %v366_v28 }
 0x141   :  { %1778 = vmatprep.subr.msk.mxu1 %vm618_vm1, %v1696_v25 }
 0x144   :  { %1779 = vmatpush3.xpose.msk.msra.mxu1 %vm618_vm1, %v1696_v25 }
 0x145   :  { %1780 = vmatprep.subr.msk.mxu1 %vm618_vm1, %v356_v26 }
 0x148   :  { %1781 = vmatpush3.xpose.msk.msra.mxu1 %vm618_vm1, %v356_v26  ;;  %v594_v26 = vld [vmem:[#allocation2 + $0x50] sm:$0xff] }
 0x14b   :  { %1783 = vmatmul.mubr.msk.f32.vlgmr.msra.gmra.mxu1 %vm618_vm1, %v1664_v29 }
 0x14c   :  { %1785 = vmatprep.mubr.msk.f32.mxu1 %vm618_vm1, %v217_v44  ;;  %v1728_v44 = vpop.f32.mrf.mxu0 }
 0x14f   :  { %1786 = vmatmul.mubr.msk.f32.gmra.mxu1 %vm618_vm1, %v1667_v43 }
 0x150   :  { %1788 = vmatprep.mubr.msk.f32.mxu1 %vm618_vm1, %v227_v46 }
 0x153   :  { %1789 = vmatmul.mubr.msk.f32.gmra.mxu1 %vm618_vm1, %v1670_v45  ;;  %v505_v45 = vpop.f32.mrf.mxu0 }
 0x154   :  { %1791 = vmatprep.mubr.msk.f32.mxu1 %vm618_vm1, %v237_v48 }
 0x155   :  { %v1731_v46 = vpop.f32.mrf.mxu0 }
 0x157   :  { %1792 = vmatmul.mubr.msk.f32.gmra.mxu1 %vm618_vm1, %v1673_v47  ;;  %v515_v47 = vpop.f32.mrf.mxu0 }
 0x158   :  { %1794 = vmatprep.mubr.msk.f32.mxu1 %vm618_vm1, %v247_v50 }
 0x159   :  { %v1734_v48 = vpop.f32.mrf.mxu0 }
 0x15b   :  { %1795 = vmatmul.mubr.msk.f32.gmra.mxu1 %vm618_vm1, %v1676_v49  ;;  %v525_v49 = vpop.f32.mrf.mxu0 }
 0x15c   :  { %1797 = vmatprep.mubr.msk.f32.mxu1 %vm618_vm1, %v257_v52 }
 0x15d   :  { %v1737_v50 = vpop.f32.mrf.mxu0 }
 0x15f   :  { %1798 = vmatmul.mubr.msk.f32.gmra.mxu1 %vm618_vm1, %v1679_v51  ;;  %v535_v51 = vpop.f32.mrf.mxu0 }
 0x160   :  { %1800 = vmatprep.mubr.msk.f32.mxu1 %vm618_vm1, %v267_v54 }
 0x161   :  { %v1740_v52 = vpop.f32.mrf.mxu0 }
 0x163   :  { %1801 = vmatmul.mubr.msk.f32.gmra.mxu1 %vm618_vm1, %v1682_v53  ;;  %v545_v53 = vpop.f32.mrf.mxu0 }
 0x164   :  { %1803 = vmatprep.mubr.msk.f32.mxu1 %vm618_vm1, %v277_v56 }
 0x165   :  { %v1743_v54 = vpop.f32.mrf.mxu0 }
 0x167   :  { %1804 = vmatmul.mubr.msk.f32.gmra.mxu1 %vm618_vm1, %v1685_v55  ;;  %v555_v55 = vpop.f32.mrf.mxu0 }
 0x169   :  { %v1746_v56 = vpop.f32.mrf.mxu0 }
 0x16b   :  { %v565_v57 = vpop.f32.mrf.mxu0 }
 0x16d   :  { %v1749_v58 = vpop.f32.mrf.mxu0 }
 0x16e   :  { %1806 = vmatprep.subr.mxu0 %v1749_v58 }
 0x16f   :  { %v575_v59 = vpop.f32.mrf.mxu0  ;;  %1807 = vmatpush3.msra.mxu0 %v1749_v58 }
 0x170   :  { %1808 = vmatprep.subr.mxu0 %v575_v59 }
 0x171   :  { %1809 = vmatpush3.msra.mxu0 %v575_v59 }
 0x172   :  { %1810 = vmatprep.subr.mxu0 %v1746_v56 }
 0x173   :  { %1811 = vmatpush3.msra.mxu0 %v1746_v56 }
 0x174   :  { %1812 = vmatprep.subr.mxu0 %v565_v57 }
 0x175   :  { %1813 = vmatpush3.msra.mxu0 %v565_v57 }
 0x176   :  { %1814 = vmatprep.subr.mxu0 %v1743_v54 }
 0x177   :  { %1815 = vmatpush3.msra.mxu0 %v1743_v54 }
 0x178   :  { %1816 = vmatprep.subr.mxu0 %v555_v55 }
 0x179   :  { %1817 = vmatpush3.msra.mxu0 %v555_v55 }
 0x17a   :  { %1818 = vmatprep.subr.mxu0 %v1740_v52 }
 0x17b   :  { %1819 = vmatpush3.msra.mxu0 %v1740_v52 }
 0x17c   :  { %1820 = vmatprep.subr.mxu0 %v545_v53 }
 0x17d   :  { %1821 = vmatpush3.msra.mxu0 %v545_v53 }
 0x17e   :  { %1822 = vmatprep.subr.mxu0 %v1737_v50 }
 0x17f   :  { %1823 = vmatpush3.msra.mxu0 %v1737_v50 }
 0x180   :  { %1824 = vmatprep.subr.mxu0 %v535_v51 }
 0x181   :  { %1825 = vmatpush3.msra.mxu0 %v535_v51 }
 0x182   :  { %1826 = vmatprep.subr.mxu0 %v1734_v48 }
 0x183   :  { %1827 = vmatpush3.msra.mxu0 %v1734_v48 }
 0x184   :  { %1828 = vmatprep.subr.mxu0 %v525_v49 }
 0x185   :  { %1829 = vmatpush3.msra.mxu0 %v525_v49 }
 0x186   :  { %1830 = vmatprep.subr.mxu0 %v1731_v46 }
 0x187   :  { %1831 = vmatpush3.msra.mxu0 %v1731_v46 }
 0x188   :  { %1832 = vmatprep.subr.mxu0 %v515_v47 }
 0x189   :  { %1833 = vmatpush3.msra.mxu0 %v515_v47 }
 0x18a   :  { %1834 = vmatprep.subr.mxu0 %v1728_v44 }
 0x18b   :  { %1835 = vmatpush3.msra.mxu0 %v1728_v44 }
 0x18c   :  { %1836 = vmatprep.subr.mxu0 %v505_v45 }
 0x18d   :  { %1837 = vmatpush3.msra.mxu0 %v505_v45 }
 0x20b   :  { %v1784_v60 = vpop.f32.mrf.mxu1 }
 0x20c   :  { %v2396_v4 = vadd.f32 %v1784_v60, %v585_v0 }
 0x20d   :  { %v781_v62 = vpop.f32.mrf.mxu1 }
 0x20e   :  { %v2393_v63 = vadd.f32 %v781_v62, %v584_v61 }
 0x20f   :  { %v1787_v1 = vpop.f32.mrf.mxu1 }
 0x210   :  { %860 = vmax.xlane.f32.xlu0 %v2393_v63  ;;  %v2402_v10 = vadd.f32 %v1787_v1, %v587_v6 }
 0x211   :  { %v791_v3 = vpop.f32.mrf.mxu1 }
 0x212   :  { %v2398_v5 = vadd.f32 %v791_v3, %v586_v2 }
 0x213   :  { %v1790_v7 = vpop.f32.mrf.mxu1 }
 0x214   :  { %862 = vmax.xlane.f32.xlu0 %v2396_v4  ;;  %864 = vmax.xlane.f32.xlu1 %v2398_v5  ;;  %v2408_v16 = vadd.f32 %v1790_v7, %v589_v12 }
 0x215   :  { %v801_v9 = vpop.f32.mrf.mxu1 }
 0x216   :  { %v2404_v11 = vadd.f32 %v801_v9, %v588_v8 }
 0x217   :  { %v1793_v13 = vpop.f32.mrf.mxu1 }
 0x218   :  { %866 = vmax.xlane.f32.xlu1 %v2402_v10  ;;  %868 = vmax.xlane.f32.xlu0 %v2404_v11  ;;  %v2414_v22 = vadd.f32 %v1793_v13, %v591_v18 }
 0x219   :  { %v811_v15 = vpop.f32.mrf.mxu1 }
 0x21a   :  { %v2410_v17 = vadd.f32 %v811_v15, %v590_v14 }
 0x21b   :  { %v1796_v19 = vpop.f32.mrf.mxu1 }
 0x21c   :  { %870 = vmax.xlane.f32.xlu1 %v2408_v16  ;;  %872 = vmax.xlane.f32.xlu0 %v2410_v17  ;;  %v2420_v28 = vadd.f32 %v1796_v19, %v593_v24 }
 0x21d   :  { %v821_v21 = vpop.f32.mrf.mxu1 }
 0x21e   :  { %v2416_v23 = vadd.f32 %v821_v21, %v592_v20 }
 0x21f   :  { %v1799_v25 = vpop.f32.mrf.mxu1 }
 0x220   :  { %874 = vmax.xlane.f32.xlu1 %v2414_v22  ;;  %876 = vmax.xlane.f32.xlu0 %v2416_v23  ;;  %v2426_v34 = vadd.f32 %v1799_v25, %v595_v30 }
 0x221   :  { %v831_v27 = vpop.f32.mrf.mxu1 }
 0x222   :  { %v2422_v29 = vadd.f32 %v831_v27, %v594_v26 }
 0x223   :  { %v1802_v31 = vpop.f32.mrf.mxu1 }
 0x224   :  { %878 = vmax.xlane.f32.xlu1 %v2420_v28  ;;  %880 = vmax.xlane.f32.xlu0 %v2422_v29  ;;  %v2432_v41 = vadd.f32 %v1802_v31, %v597_v36 }
 0x225   :  { %v841_v33 = vpop.f32.mrf.mxu1 }
 0x226   :  { %v2428_v35 = vadd.f32 %v841_v33, %v596_v32 }
 0x227   :  { %v1805_v37 = vpop.f32.mrf.mxu1 }
 0x228   :  { %882 = vmax.xlane.f32.xlu1 %v2426_v34  ;;  %884 = vmax.xlane.f32.xlu0 %v2428_v35  ;;  %v2436_v43 = vadd.f32 %v1805_v37, %v599_v39 }
 0x229   :  { %v851_v40 = vpop.f32.mrf.mxu1 }
 0x22a   :  { %v2434_v42 = vadd.f32 %v851_v40, %v598_v38 }
 0x22c   :  { %886 = vmax.xlane.f32.xlu1 %v2432_v41  ;;  %888 = vmax.xlane.f32.xlu0 %v2434_v42 }
 0x230   :  { %890 = vmax.xlane.f32.xlu1 %v2436_v43 }
 0x299   :  { %v861_v60 = vpop.xlane.xlu0 %860 }
 0x29a   :  { %v892_v61 = vsub.f32 %v2393_v63, %v861_v60 }
 0x29c   :  { %v908_v62 = vmul.f32 1.442695, %v892_v61 }
 0x29d   :  { %v863_v0 = vpop.xlane.xlu0 %862  ;;  %v865_v1 = vpop.xlane.xlu1 %864 }
 0x29e   :  { %1911 = vpow2.f32 %v908_v62  ;;  %v893_v2 = vsub.f32 %v2396_v4, %v863_v0  ;;  %v894_v3 = vsub.f32 %v2398_v5, %v865_v1 }
 0x2a0   :  { %v910_v6 = vmul.f32 1.442695, %v893_v2  ;;  %v912_v7 = vmul.f32 1.442695, %v894_v3 }
 0x2a1   :  { %v867_v8 = vpop.xlane.xlu1 %866  ;;  %v869_v9 = vpop.xlane.xlu0 %868 }
 0x2a2   :  { %1913 = vpow2.f32 %v910_v6  ;;  %v895_v12 = vsub.f32 %v2402_v10, %v867_v8  ;;  %v896_v13 = vsub.f32 %v2404_v11, %v869_v9 }
 0x2a3   :  { %1915 = vpow2.f32 %v912_v7 }
 0x2a4   :  { %v914_v14 = vmul.f32 1.442695, %v895_v12  ;;  %v916_v63 = vmul.f32 1.442695, %v896_v13 }
 0x2a5   :  { %v871_v15 = vpop.xlane.xlu1 %870  ;;  %v873_v18 = vpop.xlane.xlu0 %872 }
 0x2a6   :  { %1917 = vpow2.f32 %v914_v14  ;;  %v897_v19 = vsub.f32 %v2408_v16, %v871_v15  ;;  %v898_v4 = vsub.f32 %v2410_v17, %v873_v18 }
 0x2a7   :  { %1919 = vpow2.f32 %v916_v63 }
 0x2a8   :  { %v918_v5 = vmul.f32 1.442695, %v897_v19  ;;  %v920_v20 = vmul.f32 1.442695, %v898_v4 }
 0x2a9   :  { %v875_v21 = vpop.xlane.xlu1 %874  ;;  %v877_v24 = vpop.xlane.xlu0 %876 }
 0x2aa   :  { %1921 = vpow2.f32 %v918_v5  ;;  %v899_v10 = vsub.f32 %v2414_v22, %v875_v21  ;;  %v900_v11 = vsub.f32 %v2416_v23, %v877_v24 }
 0x2ab   :  { %v2450_v25 = vpop.eup %1911  ;;  %1923 = vpow2.f32 %v920_v20 }
 0x2ac   :  { %v922_v26 = vmul.f32 1.442695, %v899_v10  ;;  %v924_v27 = vmul.f32 1.442695, %v900_v11  ;;  %940 = vadd.xlane.f32.xlu0 %v2450_v25 }
 0x2ad   :  { %v879_v16 = vpop.xlane.xlu1 %878  ;;  %v881_v30 = vpop.xlane.xlu0 %880 }
 0x2ae   :  { %1925 = vpow2.f32 %v922_v26  ;;  %v901_v17 = vsub.f32 %v2420_v28, %v879_v16  ;;  %v902_v31 = vsub.f32 %v2422_v29, %v881_v30 }
 0x2af   :  { %v2455_v32 = vpop.eup %1913  ;;  %1927 = vpow2.f32 %v924_v27 }
 0x2b0   :  { %v2457_v22 = vpop.eup %1915  ;;  %v926_v23 = vmul.f32 1.442695, %v901_v17  ;;  %v928_v33 = vmul.f32 1.442695, %v902_v31  ;;  %942 = vadd.xlane.f32.xlu1 %v2455_v32 }
 0x2b1   :  { %944 = vadd.xlane.f32.xlu0 %v2457_v22  ;;  %v883_v36 = vpop.xlane.xlu1 %882  ;;  %v885_v37 = vpop.xlane.xlu0 %884 }
 0x2b2   :  { %1929 = vpow2.f32 %v926_v23  ;;  %v903_v38 = vsub.f32 %v2426_v34, %v883_v36  ;;  %v904_v28 = vsub.f32 %v2428_v35, %v885_v37 }
 0x2b3   :  { %v2463_v39 = vpop.eup %1917  ;;  %1931 = vpow2.f32 %v928_v33 }
 0x2b4   :  { %v2465_v29 = vpop.eup %1919  ;;  %v930_v40 = vmul.f32 1.442695, %v903_v38  ;;  %v932_v44 = vmul.f32 1.442695, %v904_v28  ;;  %946 = vadd.xlane.f32.xlu1 %v2463_v39 }
 0x2b5   :  { %948 = vadd.xlane.f32.xlu0 %v2465_v29  ;;  %v887_v45 = vpop.xlane.xlu1 %886  ;;  %v889_v46 = vpop.xlane.xlu0 %888 }
 0x2b6   :  { %1933 = vpow2.f32 %v930_v40  ;;  %v905_v47 = vsub.f32 %v2432_v41, %v887_v45  ;;  %v906_v34 = vsub.f32 %v2434_v42, %v889_v46 }
 0x2b7   :  { %v2471_v48 = vpop.eup %1921  ;;  %1935 = vpow2.f32 %v932_v44 }
 0x2b8   :  { %v2473_v35 = vpop.eup %1923  ;;  %v934_v49 = vmul.f32 1.442695, %v905_v47  ;;  %v936_v50 = vmul.f32 1.442695, %v906_v34  ;;  %950 = vadd.xlane.f32.xlu1 %v2471_v48 }
 0x2b9   :  { %952 = vadd.xlane.f32.xlu0 %v2473_v35  ;;  %v891_v51 = vpop.xlane.xlu1 %890 }
 0x2ba   :  { %1937 = vpow2.f32 %v934_v49  ;;  %v907_v52 = vsub.f32 %v2436_v43, %v891_v51 }
 0x2bb   :  { %v2478_v53 = vpop.eup %1925  ;;  %1939 = vpow2.f32 %v936_v50 }
 0x2bc   :  { %v2480_v41 = vpop.eup %1927  ;;  %v938_v42 = vmul.f32 1.442695, %v907_v52  ;;  %954 = vadd.xlane.f32.xlu1 %v2478_v53 }
 0x2bd   :  { %956 = vadd.xlane.f32.xlu0 %v2480_v41 }
 0x2be   :  { %1941 = vpow2.f32 %v938_v42 }
 0x2bf   :  { %v2484_v54 = vpop.eup %1929 }
 0x2c0   :  { %v2486_v55 = vpop.eup %1931  ;;  %958 = vadd.xlane.f32.xlu1 %v2484_v54 }
 0x2c1   :  { %960 = vadd.xlane.f32.xlu0 %v2486_v55 }
 0x2c3   :  { %v2490_v43 = vpop.eup %1933 }
 0x2c4   :  { %v2492_v56 = vpop.eup %1935  ;;  %962 = vadd.xlane.f32.xlu1 %v2490_v43 }
 0x2c5   :  { %964 = vadd.xlane.f32.xlu0 %v2492_v56 }
 0x2c7   :  { %v2496_v57 = vpop.eup %1937 }
 0x2c8   :  { %v2498_v58 = vpop.eup %1939  ;;  %966 = vadd.xlane.f32.xlu1 %v2496_v57 }
 0x2c9   :  { %968 = vadd.xlane.f32.xlu0 %v2498_v58 }
 0x2cb   :  { %v2502_v59 = vpop.eup %1941 }
 0x2cc   :  { %970 = vadd.xlane.f32.xlu1 %v2502_v59 }
 0x335   :  { %v941_v60 = vpop.xlane.xlu0 %940 }
 0x336   :  { %1943 = vrcp.f32 %v941_v60  ;;  %v1322_v60 = vld [vmem:[#allocation7] sm:$0xff] }
 0x337   :  { %1897 = vmatprep.subr.mxu1 %v1322_v60 }
 0x338   :  { %1898 = vmatpush3.msra.mxu1 %v1322_v60 }
 0x339   :  { %v943_v61 = vpop.xlane.xlu1 %942 }
 0x33a   :  { %1945 = vrcp.f32 %v943_v61  ;;  %v945_v62 = vpop.xlane.xlu0 %944 }
 0x33b   :  { %1947 = vrcp.f32 %v945_v62  ;;  %v1320_v62 = vld [vmem:[%s2540_s1] sm:$0xff] }
 0x33c   :  { %1899 = vmatprep.mubr.msk.f32.mxu1 %vm1323_vm2, %v1320_v62 }
 0x33d   :  { %v947_v0 = vpop.xlane.xlu1 %946 }
 0x33e   :  { %1949 = vrcp.f32 %v947_v0  ;;  %v949_v1 = vpop.xlane.xlu0 %948  ;;  %v1321_v0 = vld [vmem:[%s2540_s1 + $0x8] sm:$0xff] }
 0x33f   :  { %1951 = vrcp.f32 %v949_v1  ;;  %v600_v1 = vld [vmem:[%s2545_s6] sm:$0xff]  ;;  %1900 = vmatmul.mubr.msk.f32.vlgmr.msra.gmra.mxu1 %vm1323_vm2, %v1321_v0 }
 0x341   :  { %v951_v2 = vpop.xlane.xlu1 %950 }
 0x342   :  { %1953 = vrcp.f32 %v951_v2  ;;  %v953_v3 = vpop.xlane.xlu0 %952 }
 0x343   :  { %v1944_v6 = vpop.eup %1943  ;;  %1955 = vrcp.f32 %v953_v3  ;;  %v617_v3 = vld [vmem:[#allocation5 + $0x78] sm:$0xff] }
 0x344   :  { %v988_v7 = vmul.f32 %v1944_v6, %v2450_v25 }
 0x345   :  { %v955_v8 = vpop.xlane.xlu1 %954 }
 0x346   :  { %1957 = vrcp.f32 %v955_v8  ;;  %v957_v9 = vpop.xlane.xlu0 %956  ;;  %1838 = vmatprep.mubr.f32.mxu0 %v988_v7 }
 0x347   :  { %v1946_v12 = vpop.eup %1945  ;;  %1959 = vrcp.f32 %v957_v9 }
 0x348   :  { %v1948_v13 = vpop.eup %1947  ;;  %v989_v14 = vmul.f32 %v1946_v12, %v2455_v32  ;;  %v616_v12 = vld [vmem:[#allocation5 + $0x70] sm:$0xff] }
 0x349   :  { %v959_v63 = vpop.xlane.xlu1 %958  ;;  %v990_v15 = vmul.f32 %v1948_v13, %v2457_v22  ;;  %v615_v13 = vld [vmem:[#allocation5 + $0x68] sm:$0xff] }
 0x34a   :  { %1961 = vrcp.f32 %v959_v63  ;;  %v961_v18 = vpop.xlane.xlu0 %960  ;;  %1839 = vmatmul.mubr.f32.vlgmr.msra.gmra.mxu0 %v989_v14 }
 0x34b   :  { %v1950_v19 = vpop.eup %1949  ;;  %1963 = vrcp.f32 %v961_v18  ;;  %1841 = vmatprep.mubr.f32.mxu0 %v990_v15  ;;  %v614_v15 = vld [vmem:[#allocation5 + $0x60] sm:$0xff] }
 0x34c   :  { %v1952_v4 = vpop.eup %1951  ;;  %v991_v5 = vmul.f32 %v1950_v19, %v2463_v39  ;;  %v613_v19 = vld [vmem:[#allocation5 + $0x58] sm:$0xff] }
 0x34d   :  { %v963_v20 = vpop.xlane.xlu1 %962  ;;  %v992_v21 = vmul.f32 %v1952_v4, %v2465_v29 }
 0x34e   :  { %1965 = vrcp.f32 %v963_v20  ;;  %v965_v24 = vpop.xlane.xlu0 %964  ;;  %1842 = vmatmul.mubr.f32.gmra.mxu0 %v991_v5  ;;  %v612_v20 = vld [vmem:[#allocation5 + $0x50] sm:$0xff] }
 0x34f   :  { %v1954_v10 = vpop.eup %1953  ;;  %1967 = vrcp.f32 %v965_v24  ;;  %1844 = vmatprep.mubr.f32.mxu0 %v992_v21  ;;  %v611_v24 = vld [vmem:[#allocation5 + $0x48] sm:$0xff] }
 0x350   :  { %v1956_v11 = vpop.eup %1955  ;;  %v993_v25 = vmul.f32 %v1954_v10, %v2471_v48  ;;  %v2066_v48 = vmov 0  }
 0x351   :  { %v967_v26 = vpop.xlane.xlu1 %966  ;;  %v994_v27 = vmul.f32 %v1956_v11, %v2473_v35  ;;  %1910 = vset.pattern.permute.xlu1 %v2066_v48  ;;  %1909 = vset.pattern.permute.xlu0 %v2066_v48  ;;  %v602_v48 = vld [vmem:[#allocation5] sm:$0xff] }
 0x352   :  { %1969 = vrcp.f32 %v967_v26  ;;  %v969_v16 = vpop.xlane.xlu0 %968  ;;  %1845 = vmatmul.mubr.f32.gmra.mxu0 %v993_v25  ;;  %v610_v26 = vld [vmem:[#allocation5 + $0x40] sm:$0xff] }
 0x353   :  { %v1958_v30 = vpop.eup %1957  ;;  %1971 = vrcp.f32 %v969_v16  ;;  %1847 = vmatprep.mubr.f32.mxu0 %v994_v27 }
 0x354   :  { %v1960_v17 = vpop.eup %1959  ;;  %v995_v31 = vmul.f32 %v1958_v30, %v2478_v53 }
 0x355   :  { %v971_v32 = vpop.xlane.xlu1 %970  ;;  %v996_v22 = vmul.f32 %v1960_v17, %v2480_v41  ;;  %v609_v17 = vld [vmem:[#allocation5 + $0x38] sm:$0xff] }
 0x356   :  { %1973 = vrcp.f32 %v971_v32  ;;  %1848 = vmatmul.mubr.f32.gmra.mxu0 %v995_v31  ;;  %v608_v31 = vld [vmem:[#allocation5 + $0x30] sm:$0xff] }
 0x357   :  { %v1962_v23 = vpop.eup %1961  ;;  %1850 = vmatprep.mubr.f32.mxu0 %v996_v22 }
 0x358   :  { %v1964_v33 = vpop.eup %1963  ;;  %v997_v36 = vmul.f32 %v1962_v23, %v2484_v54 }
 0x359   :  { %v998_v37 = vmul.f32 %v1964_v33, %v2486_v55  ;;  %v607_v33 = vld [vmem:[#allocation5 + $0x28] sm:$0xff] }
 0x35a   :  { %1851 = vmatmul.mubr.f32.gmra.mxu0 %v997_v36 }
 0x35b   :  { %v1966_v38 = vpop.eup %1965  ;;  %1853 = vmatprep.mubr.f32.mxu0 %v998_v37  ;;  %v606_v37 = vld [vmem:[#allocation5 + $0x20] sm:$0xff] }
 0x35c   :  { %v1968_v28 = vpop.eup %1967  ;;  %v999_v39 = vmul.f32 %v1966_v38, %v2490_v43 }
 0x35d   :  { %v1000_v29 = vmul.f32 %v1968_v28, %v2492_v56 }
 0x35e   :  { %1854 = vmatmul.mubr.f32.gmra.mxu0 %v999_v39 }
 0x35f   :  { %v1970_v40 = vpop.eup %1969  ;;  %1856 = vmatprep.mubr.f32.mxu0 %v1000_v29  ;;  %v605_v29 = vld [vmem:[#allocation5 + $0x18] sm:$0xff] }
 0x360   :  { %v1972_v44 = vpop.eup %1971  ;;  %v1001_v45 = vmul.f32 %v1970_v40, %v2496_v57 }
 0x361   :  { %v1002_v46 = vmul.f32 %v1972_v44, %v2498_v58  ;;  %v604_v44 = vld [vmem:[#allocation5 + $0x10] sm:$0xff] }
 0x362   :  { %1857 = vmatmul.mubr.f32.gmra.mxu0 %v1001_v45 }
 0x363   :  { %v1974_v47 = vpop.eup %1973  ;;  %1859 = vmatprep.mubr.f32.mxu0 %v1002_v46 }
 0x364   :  { %v1003_v34 = vmul.f32 %v1974_v47, %v2502_v59  ;;  %v603_v47 = vld [vmem:[#allocation5 + $0x8] sm:$0xff] }
 0x366   :  { %1860 = vmatmul.mubr.f32.gmra.mxu0 %v1003_v34 }
 0x367   :  { %1894 = vmatprep.mubr.f32.mxu0 %v600_v1 }
 0x40a   :  { %v1840_v35 = vpop.f32.mrf.mxu0 }
 0x40c   :  { %v1070_v49 = vpop.f32.mrf.mxu0 }
 0x40e   :  { %v1843_v50 = vpop.f32.mrf.mxu0 }
 0x410   :  { %v1080_v51 = vpop.f32.mrf.mxu0 }
 0x412   :  { %v1846_v52 = vpop.f32.mrf.mxu0 }
 0x414   :  { %v1090_v53 = vpop.f32.mrf.mxu0 }
 0x416   :  { %v1849_v41 = vpop.f32.mrf.mxu0 }
 0x418   :  { %v1100_v42 = vpop.f32.mrf.mxu0 }
 0x41a   :  { %v1852_v54 = vpop.f32.mrf.mxu0 }
 0x41c   :  { %v1110_v55 = vpop.f32.mrf.mxu0 }
 0x41e   :  { %v1855_v43 = vpop.f32.mrf.mxu0 }
 0x420   :  { %v1120_v56 = vpop.f32.mrf.mxu0 }
 0x422   :  { %v1858_v57 = vpop.f32.mrf.mxu0 }
 0x423   :  { %1216 = vperm.xlu1 %1910, %v1858_v57  }
 0x424   :  { %v1130_v58 = vpop.f32.mrf.mxu0 }
 0x426   :  { %v1861_v59 = vpop.f32.mrf.mxu0 }
 0x427   :  { %1211 = vperm.xlu1 %1910, %v1130_v58   ;;  %1226 = vperm.xlu0 %1909, %v1861_v59  }
 0x428   :  { %v1140_v61 = vpop.f32.mrf.mxu0 }
 0x42b   :  { %1206 = vperm.xlu1 %1910, %v1855_v43   ;;  %1181 = vperm.xlu0 %1909, %v1100_v42  }
 0x42f   :  { %1171 = vperm.xlu0 %1909, %v1090_v53   ;;  %1221 = vperm.xlu1 %1910, %v1140_v61   ;;  %v1901_v53 = vpop.f32.mrf.mxu1 }
 0x433   :  { %1161 = vperm.xlu0 %1909, %v1080_v51   ;;  %1201 = vperm.xlu1 %1910, %v1120_v56  }
 0x437   :  { %1151 = vperm.xlu0 %1909, %v1070_v49   ;;  %1196 = vperm.xlu1 %1910, %v1852_v54   ;;  %v1396_v54 = vpop.f32.mrf.mxu1 }
 0x43b   :  { %1191 = vperm.xlu1 %1910, %v1110_v55  }
 0x43f   :  { %1186 = vperm.xlu1 %1910, %v1849_v41  }
 0x443   :  { %1176 = vperm.xlu1 %1910, %v1846_v52   ;;  %v601_v52 = vld [vmem:[%s2545_s6 + $0x8] sm:$0xff] }
 0x447   :  { %1166 = vperm.xlu1 %1910, %v1843_v50  }
 0x44b   :  { %1156 = vperm.xlu1 %1910, %v1840_v35  }
 0x49e   :  { %v1217_v2 = vpop.permute.xlu1 %1216 }
 0x49f   :  { %v1242_v18 = vmul.f32 %v1217_v2, %v615_v13 }
 0x4a2   :  { %v1212_v6 = vpop.permute.xlu1 %1211  ;;  %v1227_v7 = vpop.permute.xlu0 %1226 }
 0x4a3   :  { %v1244_v8 = vmul.f32 %v1227_v7, %v617_v3  ;;  %v1241_v5 = vmul.f32 %v1212_v6, %v614_v15 }
 0x4a5   :  { %1862 = vmatprep.subr.mxu0 %v1244_v8 }
 0x4a6   :  { %v1207_v9 = vpop.permute.xlu1 %1206  ;;  %1863 = vmatpush3.msra.mxu0 %v1244_v8  ;;  %v1182_v25 = vpop.permute.xlu0 %1181 }
 0x4a7   :  { %v1240_v21 = vmul.f32 %v1207_v9, %v613_v19  ;;  %v1235_v36 = vmul.f32 %v1182_v25, %v608_v31 }
 0x4aa   :  { %v1222_v14 = vpop.permute.xlu1 %1221  ;;  %v1172_v32 = vpop.permute.xlu0 %1171 }
 0x4ab   :  { %v1243_v63 = vmul.f32 %v1222_v14, %v616_v12  ;;  %v1233_v40 = vmul.f32 %v1172_v32, %v606_v37 }
 0x4ad   :  { %1864 = vmatprep.subr.mxu0 %v1243_v63 }
 0x4ae   :  { %1865 = vmatpush3.msra.mxu0 %v1243_v63  ;;  %v1202_v4 = vpop.permute.xlu1 %1201  ;;  %v1162_v39 = vpop.permute.xlu0 %1161 }
 0x4af   :  { %1866 = vmatprep.subr.mxu0 %v1242_v18  ;;  %v1239_v11 = vmul.f32 %v1202_v4, %v612_v20  ;;  %v1231_v34 = vmul.f32 %v1162_v39, %v604_v44 }
 0x4b0   :  { %1867 = vmatpush3.msra.mxu0 %v1242_v18 }
 0x4b1   :  { %1868 = vmatprep.subr.mxu0 %v1241_v5 }
 0x4b2   :  { %1869 = vmatpush3.msra.mxu0 %v1241_v5  ;;  %v1197_v10 = vpop.permute.xlu1 %1196  ;;  %v1152_v35 = vpop.permute.xlu0 %1151 }
 0x4b3   :  { %1870 = vmatprep.subr.mxu0 %v1240_v21  ;;  %v1238_v27 = vmul.f32 %v1197_v10, %v611_v24  ;;  %v1229_v51 = vmul.f32 %v1152_v35, %v602_v48 }
 0x4b4   :  { %1871 = vmatpush3.msra.mxu0 %v1240_v21 }
 0x4b5   :  { %1872 = vmatprep.subr.mxu0 %v1239_v11 }
 0x4b6   :  { %1873 = vmatpush3.msra.mxu0 %v1239_v11  ;;  %v1192_v16 = vpop.permute.xlu1 %1191 }
 0x4b7   :  { %v1237_v30 = vmul.f32 %v1192_v16, %v610_v26  ;;  %1874 = vmatprep.subr.mxu0 %v1238_v27 }
 0x4b8   :  { %1875 = vmatpush3.msra.mxu0 %v1238_v27 }
 0x4b9   :  { %1876 = vmatprep.subr.mxu0 %v1237_v30 }
 0x4ba   :  { %1877 = vmatpush3.msra.mxu0 %v1237_v30  ;;  %v1187_v22 = vpop.permute.xlu1 %1186 }
 0x4bb   :  { %v1236_v23 = vmul.f32 %v1187_v22, %v609_v17 }
 0x4bd   :  { %1878 = vmatprep.subr.mxu0 %v1236_v23 }
 0x4be   :  { %1879 = vmatpush3.msra.mxu0 %v1236_v23  ;;  %v1177_v38 = vpop.permute.xlu1 %1176 }
 0x4bf   :  { %v1234_v28 = vmul.f32 %v1177_v38, %v607_v33  ;;  %1880 = vmatprep.subr.mxu0 %v1235_v36 }
 0x4c0   :  { %1881 = vmatpush3.msra.mxu0 %v1235_v36 }
 0x4c1   :  { %1882 = vmatprep.subr.mxu0 %v1234_v28 }
 0x4c2   :  { %1883 = vmatpush3.msra.mxu0 %v1234_v28  ;;  %v1167_v45 = vpop.permute.xlu1 %1166 }
 0x4c3   :  { %v1232_v46 = vmul.f32 %v1167_v45, %v605_v29  ;;  %1884 = vmatprep.subr.mxu0 %v1233_v40 }
 0x4c4   :  { %1885 = vmatpush3.msra.mxu0 %v1233_v40 }
 0x4c5   :  { %1886 = vmatprep.subr.mxu0 %v1232_v46 }
 0x4c6   :  { %1887 = vmatpush3.msra.mxu0 %v1232_v46  ;;  %v1157_v49 = vpop.permute.xlu1 %1156 }
 0x4c7   :  { %v1230_v50 = vmul.f32 %v1157_v49, %v603_v47  ;;  %1888 = vmatprep.subr.mxu0 %v1231_v34 }
 0x4c8   :  { %1889 = vmatpush3.msra.mxu0 %v1231_v34 }
 0x4c9   :  { %1890 = vmatprep.subr.mxu0 %v1230_v50 }
 0x4ca   :  { %1891 = vmatpush3.msra.mxu0 %v1230_v50 }
 0x4cb   :  { %1892 = vmatprep.subr.mxu0 %v1229_v51 }
 0x4cc   :  { %1893 = vmatpush3.msra.mxu0 %v1229_v51 }
 0x4cd   :  { %1895 = vmatmul.mubr.f32.vlgmr.msra.gmra.mxu0 %v601_v52 }
 0x58d   :  { %v1896_v41 = vpop.f32.mrf.mxu0 }
 0x58e   :  { %v1406_v42 = vmul.f32 %v1901_v53, %v1896_v41 }
 0x58f   :  { %v1311_v55 = vpop.f32.mrf.mxu0 }
 0x590   :  { %1408 = vst [vmem:[#allocation8 + $0x8] sm:$0xff] %v1406_v42  ;;  %v1405_v43 = vmul.f32 %v1396_v54, %v1311_v55 }
 0x592   :  { %1407 = vst [vmem:[#allocation8] sm:$0xff] %v1405_v43 }
 0x593   :  { %2046 = shalt.err (!%p2043_p5)
}
 0x594   :  { %1420 = dma.vmem_to_hbm [thread:$0]  %s1415_s18, 256, %s2548_s9, [#allocation4], %s2063_s14, %s2063_s14, %s2064_s15  }
 0x595   :  { %2059 = dma.done.wait [#allocation4], 256  }
 0x596   :  { %2060 = vsyncadd [#allocation4], 4294967040 }
 0x597   :  { %1424 = vsyncpa [#allocation3], 1 }
 0x598   :  { %1425 = vsyncpa [#allocation6], 1 }
 0x599   :  { %1426 = vsyncpa [#allocation4], 1 }

</bundles_post_ra>
